<compile_context>
chip_gen: v7x
topology: tpu7x:2x2x1
jax: 0.10.0
libtpu: 0.0.40
codegen_flags: <defaults>
</compile_context>

<pallas_src>
import jax
import jax.numpy as jnp
from jax.experimental import pallas as pl
from jax.experimental.pallas import tpu as pltpu


# ----------------------------------------------------------------------------- kernels


def _fused_pool_kernel(x_ref, p_ref, o_ref):
    """x_ref: (TR, H*W); p_ref: (H*W, Ho*Wo); o_ref: (TR, Ho*Wo)."""
    x = x_ref[...]
    p = p_ref[...]
    if x.dtype != p.dtype:                      # trace-time branch: explicit cast
        x = x.astype(p.dtype)
    o_ref[...] = jnp.dot(x, p, preferred_element_type=jnp.float32).astype(o_ref.dtype)


def _separable_pool_kernel(x_ref, pw_ref, ph_ref, o_ref):
    """Fallback for large images (fused P too big for VMEM).

    x_ref: (RB, H, W); pw_ref: (W, Wo); ph_ref: (H, Ho); o_ref: (RB, Ho, Wo).
    Two 2-D MXU matmuls per block (channels/batch folded into M); the minor-dim
    transposes ride the XLU slot.
    """
    rb, h, w = x_ref.shape
    _, ho, wo = o_ref.shape
    x = x_ref[...]
    pw = pw_ref[...]
    ph = ph_ref[...]
    if x.dtype != pw.dtype:
        x = x.astype(pw.dtype)
    # Pool width: (RB*H, W) @ (W, Wo)
    t = jnp.dot(x.reshape(rb * h, w), pw, preferred_element_type=jnp.float32)
    # Bring H to the minor position, pool height: (RB*Wo, H) @ (H, Ho)
    t = jnp.swapaxes(t.reshape(rb, h, wo), 1, 2).reshape(rb * wo, h)
    if ph.dtype != t.dtype:
        ph = ph.astype(t.dtype)
    u = jnp.dot(t, ph, preferred_element_type=jnp.float32)          # (RB*Wo, Ho)
    u = jnp.swapaxes(u.reshape(rb, wo, ho), 1, 2)                    # (RB, Ho, Wo)
    o_ref[...] = u.astype(o_ref.dtype)


# ----------------------------------------------------------------------------- setup


def _round_up(x, m):
    return ((x + m - 1) // m) * m


def _pool_matrix(n_src, stride, dtype):
    """(n_src, n_dst) matrix: column j averages source indices [j*stride, (j+1)*stride)."""
    n_dst = n_src // stride
    src = jnp.arange(n_src)[:, None]
    dst = jnp.arange(n_dst)[None, :]
    return (src // stride == dst).astype(dtype) / float(stride)


def _fused_row_tile(rows, k, n, itemsize, m_target=256, vmem_budget=8 << 20):
    """Row tile for the (rows, K) @ (K, N) fused matmul.

    Multiple of 8 (sublane) unless it spans all rows; ~m_target rows to feed the MXU
    M dimension (256 matches v6e/v7x width); >=2 grid steps when there is enough work
    (v7x has 2 TensorCores); shrunk to keep the double-buffered x/out blocks in VMEM.
    """
    tr = min(rows, m_target)
    if tr == rows and rows >= 128:            # enough rows: split across the 2 TCs
        tr = _round_up(pl.cdiv(rows, 2), 8)
    elif tr < rows:
        tr = _round_up(tr, 8)
    while tr > 8 and 2 * itemsize * tr * (k + n) > vmem_budget:
        tr = max(8, _round_up(tr // 2, 8))
    return min(tr, rows)


def _separable_row_tile(rows, h, w, ho, wo, itemsize, vmem_budget=8 << 20):
    per_row = itemsize * 2 * (h * w + ho * wo + h * wo)   # dbl-buffered blocks + intermediate
    rb = max(1, min(rows, vmem_budget // max(per_row, 1)))
    if rows >= 2:
        rb = min(rb, pl.cdiv(rows, 2))        # keep >=2 grid steps (v7x megacore)
    return int(rb)


def make_downsample(n_in, n_out, stride, height, width, dtype=jnp.float32,
                    fused_p_budget_bytes=4 << 20):
    """One-time setup; returns forward(x: (B, n_in, H, W)) -> (B, n_out, H//s, W//s)."""
    assert n_out % n_in == 0
    h_out, w_out = height // stride, width // stride
    dt = jnp.dtype(dtype)

    # 1/stride is exact in bf16/f32 only for power-of-two strides; otherwise keep fp32.
    exact = stride & (stride - 1) == 0
    op_dtype = dt if (exact and dt in (jnp.dtype(jnp.float32), jnp.dtype(jnp.bfloat16))) \
        else jnp.dtype(jnp.float32)

    pool_h = _pool_matrix(height, stride, op_dtype)   # (H, Ho)
    pool_w = _pool_matrix(width, stride, op_dtype)    # (W, Wo)

    # Fused pooling operator P: (H*W, Ho*Wo).  Gate on its VMEM footprint (v7x has
    # only 64 MiB VMEM / 32 MiB default scoped); fall back to separable otherwise.
    p_bytes = height * width * h_out * w_out * op_dtype.itemsize
    use_fused = p_bytes <= fused_p_budget_bytes
    p_fused = jnp.kron(pool_h, pool_w) if use_fused else None

    @jax.jit
    def forward(x):
        batch = x.shape[0]
        rows = batch * n_in
        itemsize = jnp.dtype(x.dtype).itemsize

        if use_fused:
            # Lane-dense: (B*Cin, H*W) in, (B*Cin, Ho*Wo) out — single matmul per block.
            xf = x.reshape(rows, height * width)
            tr = _fused_row_tile(rows, height * width, h_out * w_out, itemsize)
            pooled = pl.pallas_call(
                _fused_pool_kernel,
                out_shape=jax.ShapeDtypeStruct((rows, h_out * w_out), x.dtype),
                grid=(pl.cdiv(rows, tr),),
                in_specs=[
                    pl.BlockSpec((tr, height * width), lambda i: (i, 0)),
                    # constant index_map -> stays VMEM-resident across grid steps
                    pl.BlockSpec((height * width, h_out * w_out), lambda i: (0, 0)),
                ],
                out_specs=pl.BlockSpec((tr, h_out * w_out), lambda i: (i, 0)),
                compiler_params=pltpu.CompilerParams(
                    dimension_semantics=("parallel",)),
            )(xf, p_fused)
        else:
            xs = x.reshape(rows, height, width)
            rb = _separable_row_tile(rows, height, width, h_out, w_out, itemsize)
            pooled = pl.pallas_call(
                _separable_pool_kernel,
                out_shape=jax.ShapeDtypeStruct((rows, h_out, w_out), x.dtype),
                grid=(pl.cdiv(rows, rb),),
                in_specs=[
                    pl.BlockSpec((rb, height, width), lambda i: (i, 0, 0)),
                    pl.BlockSpec((width, w_out), lambda i: (0, 0)),
                    pl.BlockSpec((height, h_out), lambda i: (0, 0)),
                ],
                out_specs=pl.BlockSpec((rb, h_out, w_out), lambda i: (i, 0, 0)),
                compiler_params=pltpu.CompilerParams(
                    dimension_semantics=("parallel",)),
            )(xs, pool_w, pool_h)

        pooled = pooled.reshape(batch, n_in, h_out, w_out)   # free: identical row-major layout
        if n_out > n_in:
            # Zero-expanded channels produced by XLA (compile-time constant), not by the
            # memory-bound kernel.
            zeros = jnp.zeros((batch, n_out - n_in, h_out, w_out), x.dtype)
            pooled = jnp.concatenate([pooled, zeros], axis=1)
        return pooled

    return forward


# ----------------------------------------------------------------------------- reference


def _reference_forward(x, n_out, stride):
    b, c, h, w = x.shape
    ho, wo = h // stride, w // stride
    xp = x[:, :, :ho * stride, :wo * stride].reshape(b, c, ho, stride, wo, stride)
    pooled = xp.mean(axis=(3, 5))
    zeros = jnp.zeros((b, n_out - c, ho, wo), x.dtype)
    return jnp.concatenate([pooled, zeros], axis=1)


if __name__ == "__main__":
    B, N_IN, N_OUT, STRIDE, H, W = 2, 4, 8, 2, 16, 16

    key = jax.random.PRNGKey(0)
    x = jax.random.normal(key, (B, N_IN, H, W), jnp.float32)
    ref = _reference_forward(x, N_OUT, STRIDE)

    # Default path: fused single-matmul pooling.
    forward = make_downsample(N_IN, N_OUT, STRIDE, H, W)
    out = jax.block_until_ready(forward(x))
    assert out.shape == (B, N_OUT, H // STRIDE, W // STRIDE), out.shape
    assert jnp.allclose(out, ref, atol=1e-5, rtol=1e-5), float(jnp.max(jnp.abs(out - ref)))

    # Fallback path (forced via a zero P budget; used for large images where the fused
    # pooling matrix would not fit VMEM, e.g. on v7x).
    forward_sep = make_downsample(N_IN, N_OUT, STRIDE, H, W, fused_p_budget_bytes=0)
    out_sep = jax.block_until_ready(forward_sep(x))
    assert jnp.allclose(out_sep, ref, atol=1e-5, rtol=1e-5), \
        float(jnp.max(jnp.abs(out_sep - ref)))

    print("KERNEL_OK")
</pallas_src>

<mosaic_0001>
module attributes {stable_mosaic.version = 11 : i64} {
  func.func @_fused_pool_kernel(%arg0: i32, %arg1: memref<8x256xf32, #tpu.memory_space<vmem>>, %arg2: memref<256x64xf32, #tpu.memory_space<vmem>>, %arg3: memref<8x64xf32, #tpu.memory_space<vmem>>) attributes {dimension_semantics = [#tpu.dimension_semantics<parallel>], iteration_bounds = array<i64: 1>, scalar_prefetch = 0 : i64, scratch_operands = 0 : i64, tpu.core_type = #tpu.core_type<tc>, window_params = [{transform_indices = @transform_0, window_bounds = array<i64: 8, 256>}, {pipeline_mode = #tpu.pipeline_mode<synchronous>, transform_indices = @transform_1, window_bounds = array<i64: 256, 64>}, {transform_indices = @transform_2, window_bounds = array<i64: 8, 64>}]} {
    %c0 = arith.constant 0 : index
    %c0_0 = arith.constant 0 : index
    %0 = vector.load %arg1[%c0, %c0_0] : memref<8x256xf32, #tpu.memory_space<vmem>>, vector<8x256xf32>
    %c0_1 = arith.constant 0 : index
    %c0_2 = arith.constant 0 : index
    %1 = vector.load %arg2[%c0_1, %c0_2] : memref<256x64xf32, #tpu.memory_space<vmem>>, vector<256x64xf32>
    %cst = arith.constant dense<0.000000e+00> : vector<8x64xf32>
    %2 = tpu.matmul %0, %1, %cst {dimension_numbers = #tpu.dot_dimension_numbers<[1], [0], [0], [1], [0, 0, 1, 1], [], []>} : vector<8x256xf32>, vector<256x64xf32>, vector<8x64xf32> -> vector<8x64xf32>
    %c0_3 = arith.constant 0 : index
    %c0_4 = arith.constant 0 : index
    %3 = vector.load %arg3[%c0_3, %c0_4] : memref<8x64xf32, #tpu.memory_space<vmem>>, vector<8x64xf32>
    tpu.vector_store %arg3[%c0_3, %c0_4], %2 {strides = array<i32>} : memref<8x64xf32, #tpu.memory_space<vmem>>, vector<8x64xf32>,
    return
  }
  func.func @transform_0(%arg0: i32) -> (i32, i32) {
    %c0_i32 = arith.constant 0 : i32
    %c0_i32_0 = arith.constant 0 : i32
    return %arg0, %c0_i32 : i32, i32
  }
  func.func @transform_1(%arg0: i32) -> (i32, i32) {
    %c0_i32 = arith.constant 0 : i32
    %c0_i32_0 = arith.constant 0 : i32
    %c0_i32_1 = arith.constant 0 : i32
    return %c0_i32, %c0_i32_0 : i32, i32
  }
  func.func @transform_2(%arg0: i32) -> (i32, i32) {
    %c0_i32 = arith.constant 0 : i32
    %c0_i32_0 = arith.constant 0 : i32
    return %arg0, %c0_i32 : i32, i32
  }
}

</mosaic_0001>

<bundles_post_ra>
// kernel: forward.1
= control target key start
LH: loop header
LB: loop body
LE: loop exit
PB: predicated region body
PF: predicated region fallthrough
CT: control target
= control target key end

     0   :  { %7 = vsyncpa [#allocation3], 0  ;;  %s230_s9 = smov [#allocation2]   ;;  %s269_s0 = inlined_call_operand.vmem [shape: f32[8,256], index: 0, kind: input, shape index: {}]   ;;  %s270_s1 = inlined_call_operand.hbm [shape: f32[256,64], index: 1, kind: input, shape index: {}]   ;;  %s271_s2 = inlined_call_operand.vmem [shape: f32[8,64], index: 2, kind: output, shape index: {}]  }
   0x1   :  { %s15_s10 = sshll.u32 %s230_s9, 4  ;;  %s206_s13 = scalar_lea.hbm %s270_s1, 4096  ;;  %s16_s10 = int_to_ptr.vmem [resolvable:$true] %s15_s10 }
   0x2   :  { %p207_p0 = scmp.ne.s32.totalorder %s270_s1, %s206_s13  ;;  %p210_p1 = scmp.lt.u32.totalorder %s206_s13, %s270_s1 }
   0x4   :  { %p212_p2 = pnand %p210_p1, %p207_p0 }
   0x6   :  { %215 = shalt.err (!%p212_p2)
}
   0x7   :  { %s216_s18 = scalar_lea.vmem %s16_s10, 4096  ;;  %p221_p4 = scmp.lt.s32.totalorder %s16_s10, %s16_s10 }
   0x8   :  { %p217_p3 = scmp.ne.s32.totalorder %s16_s10, %s216_s18  ;;  %p222_p5 = scmp.lt.s32.totalorder %s216_s18, %s216_s18 }
   0xa   :  { %p223_p6 = por %p222_p5, %p221_p4 }
   0xc   :  { %p224_p7 = pnand %p223_p6, %p217_p3 }
   0xe   :  { %227 = shalt.err (!%p224_p7)
}
   0xf   :  { %s231_s19 = smov 128   ;;  %s232_s20 = smov 8  }
  0x10   :  { %21 = dma.hbm_to_vmem [thread:$0]  %s270_s1, 4096, %s16_s10, [#allocation3], %s231_s19, %s231_s19, %s232_s20  }
  0x11   :  { %228 = dma.done.wait [#allocation3], 4096  }
  0x12   :  { %229 = vsyncadd [#allocation3], 4294963200  ;;  %v43_v0 = vld [vmem:[#allocation2 + $0x80] sm:$0xff]  ;;  %v44_v1 = vld [vmem:[#allocation2 + $0x88] sm:$0xff]  ;;  %vm129_vm0 = vcmask 523264  }
  0x13   :  { %v27_v2 = vld [vmem:[#allocation2] sm:$0xff]  ;;  %v171_v3 = vpack.c.bf16 %v44_v1, %v43_v0  ;;  %v28_v4 = vld [vmem:[#allocation2 + $0x8] sm:$0xff]  ;;  %v45_v5 = vld [vmem:[#allocation2 + $0x90] sm:$0xff] }
  0x14   :  { %v46_v6 = vld [vmem:[#allocation2 + $0x98] sm:$0xff]  ;;  %v173_v7 = vpack.c.bf16 %v28_v4, %v27_v2  ;;  %v29_v9 = vld [vmem:[#allocation2 + $0x10] sm:$0xff]  ;;  %v47_v11 = vld [vmem:[#allocation2 + $0xa0] sm:$0xff] }
  0x15   :  { %v175_v8 = vpack.c.bf16 %v46_v6, %v45_v5  ;;  %v30_v10 = vld [vmem:[#allocation2 + $0x18] sm:$0xff]  ;;  %172 = vmatprep.subr.bf16.mxu0 %v171_v3  ;;  %v48_v12 = vld [vmem:[#allocation2 + $0xa8] sm:$0xff]  ;;  %v31_v15 = vld [vmem:[#allocation2 + $0x20] sm:$0xff] }
  0x16   :  { %174 = vmatpush3.bf16.msra.mxu0 %v173_v7  ;;  %v177_v13 = vpack.c.bf16 %v30_v10, %v29_v9  ;;  %v179_v14 = vpack.c.bf16 %v48_v12, %v47_v11  ;;  %v32_v16 = vld [vmem:[#allocation2 + $0x28] sm:$0xff]  ;;  %v49_v17 = vld [vmem:[#allocation2 + $0xb0] sm:$0xff]  ;;  %v50_v18 = vld [vmem:[#allocation2 + $0xb8] sm:$0xff] }
  0x17   :  { %176 = vmatprep.subr.bf16.mxu0 %v175_v8  ;;  %v181_v19 = vpack.c.bf16 %v32_v16, %v31_v15  ;;  %v183_v20 = vpack.c.bf16 %v50_v18, %v49_v17  ;;  %v33_v21 = vld [vmem:[#allocation2 + $0x30] sm:$0xff]  ;;  %v34_v22 = vld [vmem:[#allocation2 + $0x38] sm:$0xff]  ;;  %v51_v23 = vld [vmem:[#allocation2 + $0xc0] sm:$0xff] }
  0x18   :  { %v52_v24 = vld [vmem:[#allocation2 + $0xc8] sm:$0xff]  ;;  %v185_v26 = vpack.c.bf16 %v34_v22, %v33_v21  ;;  %v35_v28 = vld [vmem:[#allocation2 + $0x40] sm:$0xff]  ;;  %v53_v30 = vld [vmem:[#allocation2 + $0xd0] sm:$0xff] }
  0x19   :  { %v26_v25 = vld [vmem:[%s269_s0 + $0x8] sm:$0xff]  ;;  %v187_v27 = vpack.c.bf16 %v52_v24, %v51_v23  ;;  %v54_v31 = vld [vmem:[#allocation2 + $0xd8] sm:$0xff]  ;;  %v37_v34 = vld [vmem:[#allocation2 + $0x50] sm:$0xff] }
  0x1a   :  { %178 = vmatpush3.bf16.msra.mxu0 %v177_v13  ;;  %123 = vmatprep.mubr.f32.mxu0 %v26_v25  ;;  %v36_v29 = vld [vmem:[#allocation2 + $0x48] sm:$0xff]  ;;  %v191_v33 = vpack.c.bf16 %v54_v31, %v53_v30  ;;  %v38_v35 = vld [vmem:[#allocation2 + $0x58] sm:$0xff]  ;;  %v55_v36 = vld [vmem:[#allocation2 + $0xe0] sm:$0xff] }
  0x1b   :  { %180 = vmatprep.subr.bf16.mxu0 %v179_v14  ;;  %v189_v32 = vpack.c.bf16 %v36_v29, %v35_v28  ;;  %v56_v37 = vld [vmem:[#allocation2 + $0xe8] sm:$0xff]  ;;  %v193_v38 = vpack.c.bf16 %v38_v35, %v37_v34  ;;  %v39_v40 = vld [vmem:[#allocation2 + $0x60] sm:$0xff]  ;;  %v57_v42 = vld [vmem:[#allocation2 + $0xf0] sm:$0xff] }
  0x1c   :  { %v195_v39 = vpack.c.bf16 %v56_v37, %v55_v36  ;;  %v40_v41 = vld [vmem:[#allocation2 + $0x68] sm:$0xff]  ;;  %v58_v43 = vld [vmem:[#allocation2 + $0xf8] sm:$0xff]  ;;  %v41_v46 = vld [vmem:[#allocation2 + $0x70] sm:$0xff] }
  0x1d   :  { %v197_v44 = vpack.c.bf16 %v40_v41, %v39_v40  ;;  %v199_v45 = vpack.c.bf16 %v58_v43, %v57_v42  ;;  %v42_v47 = vld [vmem:[#allocation2 + $0x78] sm:$0xff]  ;;  %v25_v49 = vld [vmem:[%s269_s0] sm:$0xff] }
  0x1e   :  { %182 = vmatpush3.bf16.msra.mxu0 %v181_v19  ;;  %v201_v48 = vpack.c.bf16 %v42_v47, %v41_v46 }
  0x1f   :  { %184 = vmatprep.subr.bf16.mxu0 %v183_v20 }
  0x22   :  { %186 = vmatpush3.bf16.msra.mxu0 %v185_v26 }
  0x23   :  { %188 = vmatprep.subr.bf16.mxu0 %v187_v27 }
  0x26   :  { %190 = vmatpush3.bf16.msra.mxu0 %v189_v32 }
  0x27   :  { %192 = vmatprep.subr.bf16.mxu0 %v191_v33 }
  0x2a   :  { %194 = vmatpush3.bf16.msra.mxu0 %v193_v38 }
  0x2b   :  { %196 = vmatprep.subr.bf16.mxu0 %v195_v39 }
  0x2e   :  { %198 = vmatpush3.bf16.msra.mxu0 %v197_v44 }
  0x2f   :  { %200 = vmatprep.subr.bf16.mxu0 %v199_v45 }
  0x32   :  { %202 = vmatpush3.bf16.msra.mxu0 %v201_v48 }
  0x35   :  { %124 = vmatmul.mubr.f32.vlgmr.msra.gmra.mrb[0].mxu0 %v25_v49 }
 0x108   :  { %v168_v50 = vpop.f32.mrb[0].mxu0 }
 0x109   :  { %v169_v51 = vpop.f32.mrb[1].mxu0 }
 0x10a   :  { %v170_v52 = vadd.f32 %v169_v51, %v168_v50 }
 0x10c   :  { %130 = vst.msk [vmem:[%s271_s2] sm:$0xff] %vm129_vm0, %v170_v52 }
 0x10d   :  { %135 = vsyncpa [#allocation3], 1 }

</bundles_post_ra>
